<compile_context>
chip_gen: v7x
topology: tpu7x:2x2x1
jax: 0.10.0
libtpu: 0.0.40
codegen_flags: <defaults>
</compile_context>

<pallas_src>
import math
import jax
import jax.numpy as jnp
from jax import lax
from jax.experimental import pallas as pl
from jax.experimental.pallas import tpu as pltpu


def _gelu_exact(x):
    # Matches torch.nn.GELU() / F.gelu default (erf-based, not tanh approx).
    return 0.5 * x * (1.0 + lax.erf(x * (1.0 / math.sqrt(2.0))))


def _round_up(n, m):
    return ((n + m - 1) // m) * m


def mlp_block_kernel(x_ref, w1_ref, b1_ref, w2_ref, b2_ref, o_ref, acc_ref):
    # Grid: (row_tiles, hidden_tiles).  The hidden axis is a reduction for the
    # second matmul, so the output block is resident across it (accumulator).
    h_idx = pl.program_id(1)

    @pl.when(h_idx == 0)
    def _():
        # Hoisted c_proj bias: accumulator starts at b2 (broadcast once).
        acc_ref[...] = jnp.broadcast_to(
            b2_ref[...].astype(jnp.float32), acc_ref.shape)

    # c_fc on this hidden tile: native-dtype operands, f32 accumulation.
    h = jnp.dot(x_ref[...], w1_ref[...], preferred_element_type=jnp.float32)
    h = _gelu_exact(h + b1_ref[...].astype(jnp.float32))

    # c_proj partial product, accumulated into the f32 scratch.
    acc_ref[...] += jnp.dot(h.astype(w2_ref.dtype), w2_ref[...],
                            preferred_element_type=jnp.float32)

    @pl.when(h_idx == pl.num_programs(1) - 1)
    def _():
        # Outer F.gelu in forward(), then cast to output dtype.
        o_ref[...] = _gelu_exact(acc_ref[...]).astype(o_ref.dtype)


def mlp_block(x, w1, b1, w2, b2, *, tm=256, tn_h=512):
    """x: (..., d_model). Applies gelu(c_proj(gelu(c_fc(x))))."""
    orig_shape = x.shape
    d_model = orig_shape[-1]
    mlp_width = w1.shape[1]
    x2d = x.reshape(-1, d_model)
    M = x2d.shape[0]

    # Lane-dense padding: feature dims to multiples of 128, rows to the tile.
    D_pad = _round_up(d_model, 128)
    tm_eff = min(tm, _round_up(M, 8))           # don't over-pad tiny inputs
    M_pad = _round_up(M, tm_eff)
    tn_eff = min(tn_h, _round_up(mlp_width, 128))
    H_pad = _round_up(mlp_width, tn_eff)

    xp = jnp.pad(x2d, ((0, M_pad - M), (0, D_pad - d_model)))
    w1p = jnp.pad(w1, ((0, D_pad - d_model), (0, H_pad - mlp_width)))
    b1p = jnp.pad(b1, (0, H_pad - mlp_width)).reshape(1, H_pad)
    w2p = jnp.pad(w2, ((0, H_pad - mlp_width), (0, D_pad - d_model)))
    b2p = jnp.pad(b2, (0, D_pad - d_model)).reshape(1, D_pad)

    grid = (M_pad // tm_eff, H_pad // tn_eff)

    out = pl.pallas_call(
        mlp_block_kernel,
        out_shape=jax.ShapeDtypeStruct((M_pad, D_pad), x.dtype),
        grid_spec=pltpu.PrefetchScalarGridSpec(
            num_scalar_prefetch=0,
            grid=grid,
            in_specs=[
                pl.BlockSpec((tm_eff, D_pad), lambda i, h: (i, 0)),   # x
                pl.BlockSpec((D_pad, tn_eff), lambda i, h: (0, h)),   # W1 tile
                pl.BlockSpec((1, tn_eff), lambda i, h: (0, h)),       # b1 tile
                pl.BlockSpec((tn_eff, D_pad), lambda i, h: (h, 0)),   # W2 tile
                pl.BlockSpec((1, D_pad), lambda i, h: (0, 0)),        # b2
            ],
            out_specs=pl.BlockSpec((tm_eff, D_pad), lambda i, h: (i, 0)),
            scratch_shapes=[pltpu.VMEM((tm_eff, D_pad), jnp.float32)],
        ),
        compiler_params=pltpu.CompilerParams(
            # Row axis is parallel (megacore shardable); hidden axis is a
            # reduction into the resident accumulator -> arbitrary.
            dimension_semantics=("parallel", "arbitrary"),
            vmem_limit_bytes=64 * 1024 * 1024,
        ),
    )(xp, w1p, b1p, w2p, b2p)

    out = out[:M, :d_model]
    return out.reshape(orig_shape)


def init_mlp_params(key, d_model, mlp_width, dtype=jnp.float32):
    # PyTorch nn.Linear default init: U(-1/sqrt(fan_in), 1/sqrt(fan_in))
    k1, k2, k3, k4 = jax.random.split(key, 4)
    lim1 = 1.0 / math.sqrt(d_model)
    lim2 = 1.0 / math.sqrt(mlp_width)
    w1 = jax.random.uniform(k1, (d_model, mlp_width), dtype, -lim1, lim1)
    b1 = jax.random.uniform(k2, (mlp_width,), dtype, -lim1, lim1)
    w2 = jax.random.uniform(k3, (mlp_width, d_model), dtype, -lim2, lim2)
    b2 = jax.random.uniform(k4, (d_model,), dtype, -lim2, lim2)
    return w1, b1, w2, b2


def mlp_block_ref(x, w1, b1, w2, b2):
    h = jax.nn.gelu(x @ w1 + b1, approximate=False)
    y = h @ w2 + b2
    return jax.nn.gelu(y, approximate=False)


if __name__ == "__main__":
    key = jax.random.PRNGKey(0)
    batch, seq, d_model, mlp_width = 2, 8, 32, 64

    kx, kp = jax.random.split(key)
    x = jax.random.normal(kx, (batch, seq, d_model), dtype=jnp.float32)
    w1, b1, w2, b2 = init_mlp_params(kp, d_model, mlp_width)

    out = mlp_block(x, w1, b1, w2, b2)
    out = jax.block_until_ready(out)

    ref = mlp_block_ref(x, w1, b1, w2, b2)
    assert out.shape == x.shape
    assert jnp.allclose(out, ref, atol=1e-5, rtol=1e-5)
    print("KERNEL_OK")
</pallas_src>

<mosaic_0001>
module attributes {stable_mosaic.version = 11 : i64} {
  func.func @mlp_block_kernel(%arg0: i32, %arg1: i32, %arg2: memref<16x128xf32, #tpu.memory_space<vmem>>, %arg3: memref<128x128xf32, #tpu.memory_space<vmem>>, %arg4: memref<1x128xf32, #tpu.memory_space<vmem>>, %arg5: memref<128x128xf32, #tpu.memory_space<vmem>>, %arg6: memref<1x128xf32, #tpu.memory_space<vmem>>, %arg7: memref<16x128xf32, #tpu.memory_space<vmem>>, %arg8: memref<16x128xf32, #tpu.memory_space<vmem>>) attributes {dimension_semantics = [#tpu.dimension_semantics<parallel>, #tpu.dimension_semantics<arbitrary>], iteration_bounds = array<i64: 1, 1>, scalar_prefetch = 0 : i64, scratch_operands = 1 : i64, tpu.core_type = #tpu.core_type<tc>, window_params = [{transform_indices = @transform_0, window_bounds = array<i64: 16, 128>}, {transform_indices = @transform_1, window_bounds = array<i64: 128, 128>}, {transform_indices = @transform_2, window_bounds = array<i64: 1, 128>}, {transform_indices = @transform_3, window_bounds = array<i64: 128, 128>}, {pipeline_mode = #tpu.pipeline_mode<synchronous>, transform_indices = @transform_4, window_bounds = array<i64: 1, 128>}, {transform_indices = @transform_5, window_bounds = array<i64: 16, 128>}]} {
    %c0_i32 = arith.constant 0 : i32
    %0 = arith.cmpi eq, %arg1, %c0_i32 : i32
    %1 = arith.extui %0 : i1 to i32
    %c0_i32_0 = arith.constant 0 : i32
    %2 = arith.cmpi ne, %1, %c0_i32_0 : i32
    scf.if %2 {
      %c0_18 = arith.constant 0 : index
      %c0_19 = arith.constant 0 : index
      %25 = vector.load %arg6[%c0_18, %c0_19] : memref<1x128xf32, #tpu.memory_space<vmem>>, vector<1x128xf32>
      %26 = vector.shape_cast %25 : vector<1x128xf32> to vector<1x128xf32>
      %27 = vector.broadcast %26 : vector<1x128xf32> to vector<16x128xf32>
      %c0_20 = arith.constant 0 : index
      %c0_21 = arith.constant 0 : index
      %28 = vector.load %arg8[%c0_20, %c0_21] : memref<16x128xf32, #tpu.memory_space<vmem>>, vector<16x128xf32>
      tpu.vector_store %arg8[%c0_20, %c0_21], %27 {strides = array<i32>} : memref<16x128xf32, #tpu.memory_space<vmem>>, vector<16x128xf32>,
    } else {
    }
    %c0 = arith.constant 0 : index
    %c0_1 = arith.constant 0 : index
    %3 = vector.load %arg2[%c0, %c0_1] : memref<16x128xf32, #tpu.memory_space<vmem>>, vector<16x128xf32>
    %c0_2 = arith.constant 0 : index
    %c0_3 = arith.constant 0 : index
    %4 = vector.load %arg3[%c0_2, %c0_3] : memref<128x128xf32, #tpu.memory_space<vmem>>, vector<128x128xf32>
    %cst = arith.constant dense<0.000000e+00> : vector<16x128xf32>
    %5 = tpu.matmul %3, %4, %cst {dimension_numbers = #tpu.dot_dimension_numbers<[1], [0], [0], [1], [0, 0, 1, 1], [], []>} : vector<16x128xf32>, vector<128x128xf32>, vector<16x128xf32> -> vector<16x128xf32>
    %c0_4 = arith.constant 0 : index
    %c0_5 = arith.constant 0 : index
    %6 = vector.load %arg4[%c0_4, %c0_5] : memref<1x128xf32, #tpu.memory_space<vmem>>, vector<1x128xf32>
    %7 = vector.broadcast %6 : vector<1x128xf32> to vector<16x128xf32>
    %8 = arith.addf %5, %7 : vector<16x128xf32>
    %cst_6 = arith.constant 5.000000e-01 : f32
    %9 = vector.broadcast %cst_6 : f32 to vector<16x128xf32>
    %10 = arith.mulf %9, %8 : vector<16x128xf32>
    %cst_7 = arith.constant 0.707106769 : f32
    %11 = vector.broadcast %cst_7 : f32 to vector<16x128xf32>
    %12 = arith.mulf %8, %11 : vector<16x128xf32>
    %13 = math.erf %12 : vector<16x128xf32>
    %cst_8 = arith.constant 1.000000e+00 : f32
    %14 = vector.broadcast %cst_8 : f32 to vector<16x128xf32>
    %15 = arith.addf %14, %13 : vector<16x128xf32>
    %16 = arith.mulf %10, %15 : vector<16x128xf32>
    %c0_9 = arith.constant 0 : index
    %c0_10 = arith.constant 0 : index
    %17 = vector.load %arg8[%c0_9, %c0_10] : memref<16x128xf32, #tpu.memory_space<vmem>>, vector<16x128xf32>
    %c0_11 = arith.constant 0 : index
    %c0_12 = arith.constant 0 : index
    %18 = vector.load %arg5[%c0_11, %c0_12] : memref<128x128xf32, #tpu.memory_space<vmem>>, vector<128x128xf32>
    %cst_13 = arith.constant dense<0.000000e+00> : vector<16x128xf32>
    %19 = tpu.matmul %16, %18, %cst_13 {dimension_numbers = #tpu.dot_dimension_numbers<[1], [0], [0], [1], [0, 0, 1, 1], [], []>} : vector<16x128xf32>, vector<128x128xf32>, vector<16x128xf32> -> vector<16x128xf32>
    %20 = arith.addf %17, %19 : vector<16x128xf32>
    %c0_14 = arith.constant 0 : index
    %c0_15 = arith.constant 0 : index
    %21 = vector.load %arg8[%c0_14, %c0_15] : memref<16x128xf32, #tpu.memory_space<vmem>>, vector<16x128xf32>
    tpu.vector_store %arg8[%c0_14, %c0_15], %20 {strides = array<i32>} : memref<16x128xf32, #tpu.memory_space<vmem>>, vector<16x128xf32>,
    %c0_i32_16 = arith.constant 0 : i32
    %22 = arith.cmpi eq, %arg1, %c0_i32_16 : i32
    %23 = arith.extui %22 : i1 to i32
    %c0_i32_17 = arith.constant 0 : i32
    %24 = arith.cmpi ne, %23, %c0_i32_17 : i32
    scf.if %24 {
      %c0_18 = arith.constant 0 : index
      %c0_19 = arith.constant 0 : index
      %25 = vector.load %arg8[%c0_18, %c0_19] : memref<16x128xf32, #tpu.memory_space<vmem>>, vector<16x128xf32>
      %cst_20 = arith.constant 5.000000e-01 : f32
      %26 = vector.broadcast %cst_20 : f32 to vector<16x128xf32>
      %27 = arith.mulf %26, %25 : vector<16x128xf32>
      %cst_21 = arith.constant 0.707106769 : f32
      %28 = vector.broadcast %cst_21 : f32 to vector<16x128xf32>
      %29 = arith.mulf %25, %28 : vector<16x128xf32>
      %30 = math.erf %29 : vector<16x128xf32>
      %cst_22 = arith.constant 1.000000e+00 : f32
      %31 = vector.broadcast %cst_22 : f32 to vector<16x128xf32>
      %32 = arith.addf %31, %30 : vector<16x128xf32>
      %33 = arith.mulf %27, %32 : vector<16x128xf32>
      %c0_23 = arith.constant 0 : index
      %c0_24 = arith.constant 0 : index
      %34 = vector.load %arg7[%c0_23, %c0_24] : memref<16x128xf32, #tpu.memory_space<vmem>>, vector<16x128xf32>
      tpu.vector_store %arg7[%c0_23, %c0_24], %33 {strides = array<i32>} : memref<16x128xf32, #tpu.memory_space<vmem>>, vector<16x128xf32>,
    } else {
    }
    return
  }
  func.func @transform_0(%arg0: i32, %arg1: i32) -> (i32, i32) {
    %c0_i32 = arith.constant 0 : i32
    %c0_i32_0 = arith.constant 0 : i32
    return %arg0, %c0_i32 : i32, i32
  }
  func.func @transform_1(%arg0: i32, %arg1: i32) -> (i32, i32) {
    %c0_i32 = arith.constant 0 : i32
    %c0_i32_0 = arith.constant 0 : i32
    return %c0_i32, %arg1 : i32, i32
  }
  func.func @transform_2(%arg0: i32, %arg1: i32) -> (i32, i32) {
    %c0_i32 = arith.constant 0 : i32
    %c0_i32_0 = arith.constant 0 : i32
    return %c0_i32, %arg1 : i32, i32
  }
  func.func @transform_3(%arg0: i32, %arg1: i32) -> (i32, i32) {
    %c0_i32 = arith.constant 0 : i32
    %c0_i32_0 = arith.constant 0 : i32
    return %arg1, %c0_i32 : i32, i32
  }
  func.func @transform_4(%arg0: i32, %arg1: i32) -> (i32, i32) {
    %c0_i32 = arith.constant 0 : i32
    %c0_i32_0 = arith.constant 0 : i32
    %c0_i32_1 = arith.constant 0 : i32
    return %c0_i32, %c0_i32_0 : i32, i32
  }
  func.func @transform_5(%arg0: i32, %arg1: i32) -> (i32, i32) {
    %c0_i32 = arith.constant 0 : i32
    %c0_i32_0 = arith.constant 0 : i32
    return %arg0, %c0_i32 : i32, i32
  }
}

</mosaic_0001>

<bundles_post_ra>
// kernel: tpu_custom_call.1
= control target key start
LH: loop header
LB: loop body
LE: loop exit
PB: predicated region body
PF: predicated region fallthrough
CT: control target
= control target key end

     0   :  { %10 = vsyncpa [#allocation4], 0  ;;  %s798_s0 = inlined_call_operand.hbm [shape: f32[16,128], index: 0, kind: input, shape index: {}]   ;;  %s799_s1 = inlined_call_operand.hbm [shape: f32[128,128], index: 1, kind: input, shape index: {}]   ;;  %s800_s2 = inlined_call_operand.hbm [shape: f32[1,128], index: 2, kind: input, shape index: {}]   ;;  %s801_s3 = inlined_call_operand.hbm [shape: f32[128,128], index: 3, kind: input, shape index: {}]   ;;  %s802_s4 = inlined_call_operand.hbm [shape: f32[1,128], index: 4, kind: input, shape index: {}]   ;;  %s803_s5 = inlined_call_operand.hbm [shape: f32[16,128], index: 5, kind: output, shape index: {}]  }
   0x1   :  { %11 = vsyncpa [#allocation7], 0 }
   0x2   :  { %12 = vsyncpa [#allocation10], 0 }
   0x3   :  { %13 = vsyncpa [#allocation5], 0  ;;  %s669_s18 = smov [#allocation6]   ;;  %s670_s20 = smov [#allocation9]  }
   0x4   :  { %s31_s19 = sshll.u32 %s669_s18, 4  ;;  %s53_s21 = sshll.u32 %s670_s20, 4  ;;  %s32_s19 = int_to_ptr.vmem [resolvable:$true] %s31_s19  ;;  %s707_s21 = int_to_ptr.vmem [resolvable:$true] %s53_s21 }
   0x5   :  { %s529_s24 = scalar_lea.hbm %s799_s1, 2048 }
   0x6   :  { %p530_p0 = scmp.ne.s32.totalorder %s799_s1, %s529_s24  ;;  %p533_p1 = scmp.lt.u32.totalorder %s529_s24, %s799_s1 }
   0x8   :  { %p535_p2 = pnand %p533_p1, %p530_p0 }
   0xa   :  { %538 = shalt.err (!%p535_p2)
}
   0xb   :  { %s539_s29 = scalar_lea.vmem %s32_s19, 2048  ;;  %p544_p4 = scmp.lt.s32.totalorder %s32_s19, %s32_s19 }
   0xc   :  { %p540_p3 = scmp.ne.s32.totalorder %s32_s19, %s539_s29  ;;  %p545_p5 = scmp.lt.s32.totalorder %s539_s29, %s539_s29 }
   0xe   :  { %p546_p6 = por %p545_p5, %p544_p4 }
  0x10   :  { %p547_p7 = pnand %p546_p6, %p540_p3 }
  0x12   :  { %550 = shalt.err (!%p547_p7)
}
  0x13   :  { %s671_s30 = smov 128   ;;  %s672_s6 = smov 8  }
  0x14   :  { %37 = dma.hbm_to_vmem [thread:$0]  %s799_s1, 2048, %s32_s19, [#allocation7], %s671_s30, %s671_s30, %s672_s6  }
  0x15   :  { %s551_s11 = scalar_lea.hbm %s801_s3, 2048 }
  0x16   :  { %p552_p8 = scmp.ne.s32.totalorder %s801_s3, %s551_s11  ;;  %p555_p9 = scmp.lt.u32.totalorder %s551_s11, %s801_s3 }
  0x18   :  { %p557_p10 = pnand %p555_p9, %p552_p8 }
  0x1a   :  { %560 = shalt.err (!%p557_p10)
}
  0x1b   :  { %s561_s16 = scalar_lea.vmem %s707_s21, 2048  ;;  %p566_p12 = scmp.lt.s32.totalorder %s707_s21, %s707_s21 }
  0x1c   :  { %p562_p11 = scmp.ne.s32.totalorder %s707_s21, %s561_s16  ;;  %p567_p13 = scmp.lt.s32.totalorder %s561_s16, %s561_s16 }
  0x1e   :  { %p568_p0 = por %p567_p13, %p566_p12 }
  0x20   :  { %p569_p1 = pnand %p568_p0, %p562_p11 }
  0x22   :  { %572 = shalt.err (!%p569_p1)
}
  0x23   :  { %59 = dma.hbm_to_vmem [thread:$0]  %s801_s3, 2048, %s707_s21, [#allocation10], %s671_s30, %s671_s30, %s672_s6  }
  0x24   :  { %s673_s18 = smov [#allocation3]   ;;  %s674_s20 = smov [#allocation8]  }
  0x25   :  { %s19_s19 = sshll.u32 %s673_s18, 4  ;;  %s44_s22 = sshll.u32 %s674_s20, 4  ;;  %s20_s19 = int_to_ptr.vmem [resolvable:$true] %s19_s19  ;;  %s45_s22 = int_to_ptr.vmem [resolvable:$true] %s44_s22 }
  0x26   :  { %s573_s25 = scalar_lea.hbm %s798_s0, 256 }
  0x27   :  { %p574_p2 = scmp.ne.s32.totalorder %s798_s0, %s573_s25  ;;  %p577_p3 = scmp.lt.u32.totalorder %s573_s25, %s798_s0 }
  0x29   :  { %p579_p4 = pnand %p577_p3, %p574_p2 }
  0x2b   :  { %582 = shalt.err (!%p579_p4)
}
  0x2c   :  { %s583_s3 = scalar_lea.vmem %s20_s19, 256  ;;  %p588_p6 = scmp.lt.s32.totalorder %s20_s19, %s20_s19 }
  0x2d   :  { %p584_p5 = scmp.ne.s32.totalorder %s20_s19, %s583_s3  ;;  %p589_p7 = scmp.lt.s32.totalorder %s583_s3, %s583_s3 }
  0x2f   :  { %p590_p8 = por %p589_p7, %p588_p6 }
  0x31   :  { %p591_p9 = pnand %p590_p8, %p584_p5 }
  0x33   :  { %594 = shalt.err (!%p591_p9)
}
  0x34   :  { %25 = dma.hbm_to_vmem [thread:$0]  %s798_s0, 256, %s20_s19, [#allocation4], %s671_s30, %s671_s30, %s672_s6  }
  0x35   :  { %s595_s10 = scalar_lea.hbm %s800_s2, 16 }
  0x36   :  { %p596_p10 = scmp.ne.s32.totalorder %s800_s2, %s595_s10  ;;  %p599_p11 = scmp.lt.u32.totalorder %s595_s10, %s800_s2 }
  0x38   :  { %p601_p12 = pnand %p599_p11, %p596_p10 }
  0x3a   :  { %604 = shalt.err (!%p601_p12)
}
  0x3b   :  { %s605_s15 = scalar_lea.vmem %s45_s22, 16  ;;  %s609_s16 = scalar_lea.vmem %s45_s22, 32 }
  0x3c   :  { %p606_p13 = scmp.ne.s32.totalorder %s45_s22, %s605_s15  ;;  %p610_p0 = scmp.lt.s32.totalorder %s45_s22, %s45_s22 }
  0x3d   :  { %p611_p1 = scmp.lt.s32.totalorder %s609_s16, %s605_s15 }
  0x3f   :  { %p612_p2 = por %p611_p1, %p610_p0 }
  0x41   :  { %p613_p3 = pnand %p612_p2, %p606_p13 }
  0x43   :  { %616 = shalt.err (!%p613_p3)
}
  0x44   :  { %47 = dma.hbm_to_vmem [thread:$0]  %s800_s2, 16, %s45_s22, [#allocation7]  }
  0x45   :  { %s675_s17 = smov [#allocation11]   ;;  %s617_s23 = scalar_lea.hbm %s802_s4, 16 }
  0x46   :  { %s66_s18 = sshll.u32 %s675_s17, 4  ;;  %p618_p4 = scmp.ne.s32.totalorder %s802_s4, %s617_s23  ;;  %s67_s18 = int_to_ptr.vmem [resolvable:$true] %s66_s18 }
  0x47   :  { %p621_p5 = scmp.lt.u32.totalorder %s617_s23, %s802_s4 }
  0x49   :  { %p623_p6 = pnand %p621_p5, %p618_p4 }
  0x4b   :  { %626 = shalt.err (!%p623_p6)
}
  0x4c   :  { %s627_s28 = scalar_lea.vmem %s67_s18, 16  ;;  %s631_s2 = scalar_lea.vmem %s67_s18, 32 }
  0x4d   :  { %p628_p7 = scmp.ne.s32.totalorder %s67_s18, %s627_s28  ;;  %p632_p8 = scmp.lt.s32.totalorder %s67_s18, %s67_s18 }
  0x4e   :  { %p633_p9 = scmp.lt.s32.totalorder %s631_s2, %s627_s28 }
  0x50   :  { %p634_p10 = por %p633_p9, %p632_p8 }
  0x52   :  { %p635_p11 = pnand %p634_p10, %p628_p7 }
  0x54   :  { %638 = shalt.err (!%p635_p11)
}
  0x55   :  { %69 = dma.hbm_to_vmem [thread:$0]  %s802_s4, 16, %s67_s18, [#allocation10]  }
  0x56   :  { %661 = dma.done.wait [#allocation4], 256  }
  0x57   :  { %662 = vsyncadd [#allocation4], 4294967040 }
  0x58   :  { %663 = dma.done.wait [#allocation7], 2064  }
  0x59   :  { %664 = vsyncadd [#allocation7], 4294965232 }
  0x5a   :  { %665 = dma.done.wait [#allocation10], 2064  }
  0x5b   :  { %666 = vsyncadd [#allocation10], 4294965232  ;;  %v100_v0 = vld [vmem:[#allocation6] sm:$0xff]  ;;  %v101_v1 = vld [vmem:[#allocation6 + $0x8] sm:$0xff]  ;;  %s676_s4 = smov [#allocation12]  }
  0x5c   :  { %v102_v2 = vld [vmem:[#allocation6 + $0x10] sm:$0xff]  ;;  %v449_v3 = vpack.c.bf16 %v101_v1, %v100_v0  ;;  %v103_v4 = vld [vmem:[#allocation6 + $0x18] sm:$0xff]  ;;  %v104_v6 = vld [vmem:[#allocation6 + $0x20] sm:$0xff]  ;;  %s327_s3 = sshll.u32 %s676_s4, 4  ;;  %s328_s3 = int_to_ptr.vmem [resolvable:$true] %s327_s3 }
  0x5d   :  { %v453_v5 = vpack.c.bf16 %v103_v4, %v102_v2  ;;  %v105_v7 = vld [vmem:[#allocation6 + $0x28] sm:$0xff]  ;;  %v106_v9 = vld [vmem:[#allocation6 + $0x30] sm:$0xff]  ;;  %v107_v10 = vld [vmem:[#allocation6 + $0x38] sm:$0xff]  ;;  %s639_s21 = scalar_lea.vmem %s328_s3, 256  ;;  %p644_p13 = scmp.lt.s32.totalorder %s328_s3, %s328_s3 }
  0x5e   :  { %450 = vmatprep.subr.bf16.mxu0 %v449_v3  ;;  %v457_v8 = vpack.c.bf16 %v105_v7, %v104_v6  ;;  %v98_v11 = vld [vmem:[#allocation3] sm:$0xff]  ;;  %v210_v12 = vld [vmem:[#allocation9] sm:$0xff]  ;;  %v213_v16 = vld [vmem:[#allocation9 + $0x18] sm:$0xff]  ;;  %v461_v20 = vpack.c.bf16 %v107_v10, %v106_v9  ;;  %p640_p12 = scmp.ne.s32.totalorder %s328_s3, %s639_s21  ;;  %p645_p0 = scmp.lt.s32.totalorder %s639_s21, %s639_s21 }
  0x5f   :  { %452 = vmatpush3.bf16.msra.mxu0 %v449_v3  ;;  %411 = vmatprep.mubr.f32.mxu0 %v98_v11  ;;  %v211_v13 = vld [vmem:[#allocation9 + $0x8] sm:$0xff]  ;;  %v212_v14 = vld [vmem:[#allocation9 + $0x10] sm:$0xff]  ;;  %v214_v18 = vld [vmem:[#allocation9 + $0x20] sm:$0xff] }
  0x60   :  { %454 = vmatprep.subr.bf16.mxu0 %v453_v5  ;;  %v481_v15 = vpack.c.bf16 %v211_v13, %v210_v12  ;;  %v485_v17 = vpack.c.bf16 %v213_v16, %v212_v14  ;;  %v215_v19 = vld [vmem:[#allocation9 + $0x28] sm:$0xff]  ;;  %v108_v21 = vld [vmem:[#allocation6 + $0x40] sm:$0xff]  ;;  %v111_v26 = vld [vmem:[#allocation6 + $0x58] sm:$0xff]  ;;  %p646_p1 = por %p645_p0, %p644_p13 }
  0x61   :  { %v109_v22 = vld [vmem:[#allocation6 + $0x48] sm:$0xff]  ;;  %v489_v23 = vpack.c.bf16 %v215_v19, %v214_v18  ;;  %v110_v25 = vld [vmem:[#allocation6 + $0x50] sm:$0xff]  ;;  %v112_v28 = vld [vmem:[#allocation6 + $0x60] sm:$0xff] }
  0x62   :  { %482 = vmatprep.subr.bf16.mxu1 %v481_v15  ;;  %v465_v24 = vpack.c.bf16 %v109_v22, %v108_v21  ;;  %v469_v27 = vpack.c.bf16 %v111_v26, %v110_v25  ;;  %v113_v29 = vld [vmem:[#allocation6 + $0x68] sm:$0xff]  ;;  %v114_v31 = vld [vmem:[#allocation6 + $0x70] sm:$0xff]  ;;  %v115_v32 = vld [vmem:[#allocation6 + $0x78] sm:$0xff]  ;;  %p647_p2 = pnand %p646_p1, %p640_p12 }
  0x63   :  { %456 = vmatpush3.bf16.msra.mxu0 %v453_v5  ;;  %484 = vmatpush3.bf16.msra.mxu1 %v481_v15  ;;  %v473_v30 = vpack.c.bf16 %v113_v29, %v112_v28  ;;  %v477_v33 = vpack.c.bf16 %v115_v32, %v114_v31  ;;  %v99_v34 = vld [vmem:[#allocation3 + $0x8] sm:$0xff]  ;;  %v218_v38 = vld [vmem:[#allocation9 + $0x40] sm:$0xff]  ;;  %v219_v39 = vld [vmem:[#allocation9 + $0x48] sm:$0xff] }
  0x64   :  { %458 = vmatprep.subr.bf16.mxu0 %v457_v8  ;;  %486 = vmatprep.subr.bf16.mxu1 %v485_v17  ;;  %v216_v35 = vld [vmem:[#allocation9 + $0x30] sm:$0xff]  ;;  %v217_v36 = vld [vmem:[#allocation9 + $0x38] sm:$0xff]  ;;  %v497_v40 = vpack.c.bf16 %v219_v39, %v218_v38  ;;  %v222_v44 = vld [vmem:[#allocation9 + $0x60] sm:$0xff] }
  0x65   :  { %v493_v37 = vpack.c.bf16 %v217_v36, %v216_v35  ;;  %v220_v41 = vld [vmem:[#allocation9 + $0x50] sm:$0xff]  ;;  %v221_v42 = vld [vmem:[#allocation9 + $0x58] sm:$0xff]  ;;  %v223_v45 = vld [vmem:[#allocation9 + $0x68] sm:$0xff] }
  0x66   :  { %v501_v43 = vpack.c.bf16 %v221_v42, %v220_v41  ;;  %v505_v46 = vpack.c.bf16 %v223_v45, %v222_v44  ;;  %v224_v47 = vld [vmem:[#allocation9 + $0x70] sm:$0xff]  ;;  %v225_v48 = vld [vmem:[#allocation9 + $0x78] sm:$0xff]  ;;  %v341_v1 = vld [vmem:[#allocation11] ss:$0 sm:$0xff] }
  0x67   :  { %460 = vmatpush3.bf16.msra.mxu0 %v457_v8  ;;  %488 = vmatpush3.bf16.msra.mxu1 %v485_v17  ;;  %v509_v49 = vpack.c.bf16 %v225_v48, %v224_v47  ;;  %v342_v50 = vld [vmem:[#allocation8] ss:$0 sm:$0xff] }
  0x68   :  { %462 = vmatprep.subr.bf16.mxu0 %v461_v20  ;;  %490 = vmatprep.subr.bf16.mxu1 %v489_v23 }
  0x6b   :  { %464 = vmatpush3.bf16.msra.mxu0 %v461_v20  ;;  %492 = vmatpush3.bf16.msra.mxu1 %v489_v23 }
  0x6c   :  { %466 = vmatprep.subr.bf16.mxu0 %v465_v24  ;;  %494 = vmatprep.subr.bf16.mxu1 %v493_v37 }
  0x6f   :  { %468 = vmatpush3.bf16.msra.mxu0 %v465_v24  ;;  %496 = vmatpush3.bf16.msra.mxu1 %v493_v37 }
  0x70   :  { %470 = vmatprep.subr.bf16.mxu0 %v469_v27  ;;  %498 = vmatprep.subr.bf16.mxu1 %v497_v40 }
  0x73   :  { %472 = vmatpush3.bf16.msra.mxu0 %v469_v27  ;;  %500 = vmatpush3.bf16.msra.mxu1 %v497_v40 }
  0x74   :  { %474 = vmatprep.subr.bf16.mxu0 %v473_v30  ;;  %502 = vmatprep.subr.bf16.mxu1 %v501_v43 }
  0x77   :  { %476 = vmatpush3.bf16.msra.mxu0 %v473_v30  ;;  %504 = vmatpush3.bf16.msra.mxu1 %v501_v43 }
  0x78   :  { %478 = vmatprep.subr.bf16.mxu0 %v477_v33  ;;  %506 = vmatprep.subr.bf16.mxu1 %v505_v46 }
  0x7b   :  { %480 = vmatpush3.bf16.msra.mxu0 %v477_v33  ;;  %508 = vmatpush3.bf16.msra.mxu1 %v505_v46 }
  0x7c   :  { %510 = vmatprep.subr.bf16.mxu1 %v509_v49 }
  0x7e   :  { %412 = vmatmul.mubr.f32.vlgmr.msra.gmra.mrb[0].mxu0 %v99_v34 }
  0x7f   :  { %512 = vmatpush3.bf16.msra.mxu1 %v509_v49 }
 0x151   :  { %v413_v51 = vpop.f32.mrb[0].mxu0 }
 0x152   :  { %v195_v52 = vadd.f32 %v413_v51, %v342_v50  ;;  %v189_v53 = vpop.f32.mrb[1].mxu0 }
 0x153   :  { %v190_v54 = vadd.f32 %v342_v50, %v189_v53 }
 0x154   :  { %v201_v55 = vmul.f32 0.70710677, %v195_v52  ;;  %v199_v62 = vmul.f32 0.5, %v195_v52 }
 0x155   :  { %v200_v56 = vmul.f32 0.70710677, %v190_v54  ;;  %v198_v60 = vmul.f32 0.5, %v190_v54 }
 0x156   :  { %521 = verf.f32 %v201_v55 }
 0x157   :  { %523 = verf.f32 %v200_v56 }
 0x160   :  { %v522_v57 = vpop.eup %521 }
 0x161   :  { %v524_v58 = vpop.eup %523  ;;  %v205_v59 = vadd.f32 1.0, %v522_v57 }
 0x162   :  { %v204_v61 = vadd.f32 1.0, %v524_v58 }
 0x163   :  { %v207_v0 = vmul.f32 %v205_v59, %v199_v62 }
 0x164   :  { %v206_v63 = vmul.f32 %v204_v61, %v198_v60 }
 0x166   :  { %446 = vmatprep.mubr.f32.mxu1 %v206_v63 }
 0x167   :  { %447 = vmatmul.mubr.f32.vlgmr.msra.gmra.mrb[0].mxu1 %v207_v0 }
 0x23a   :  { %v448_v2 = vpop.f32.mrb[0].mxu1 }
 0x23b   :  { %v302_v3 = vadd.f32 %v448_v2, %v341_v1  ;;  %v292_v4 = vpop.f32.mrb[1].mxu1 }
 0x23c   :  { %v301_v5 = vadd.f32 %v341_v1, %v292_v4 }
 0x23d   :  { %v313_v6 = vmul.f32 0.70710677, %v302_v3  ;;  %v311_v10 = vmul.f32 0.5, %v302_v3 }
 0x23e   :  { %v312_v7 = vmul.f32 0.70710677, %v301_v5  ;;  %v310_v12 = vmul.f32 0.5, %v301_v5 }
 0x23f   :  { %525 = verf.f32 %v313_v6 }
 0x240   :  { %527 = verf.f32 %v312_v7 }
 0x249   :  { %v526_v8 = vpop.eup %525 }
 0x24a   :  { %v528_v9 = vpop.eup %527  ;;  %v317_v11 = vadd.f32 1.0, %v526_v8 }
 0x24b   :  { %v316_v13 = vadd.f32 1.0, %v528_v9 }
 0x24c   :  { %v319_v14 = vmul.f32 %v317_v11, %v311_v10 }
 0x24d   :  { %v318_v15 = vmul.f32 %v316_v13, %v310_v12 }
 0x24e   :  { %321 = vst [vmem:[#allocation12 + $0x8] sm:$0xff] %v319_v14 }
 0x24f   :  { %320 = vst [vmem:[#allocation12] sm:$0xff] %v318_v15 }
 0x250   :  { %650 = shalt.err (!%p647_p2)
}
 0x251   :  { %s651_s9 = scalar_lea.hbm %s803_s5, 256 }
 0x252   :  { %p652_p3 = scmp.ne.s32.totalorder %s803_s5, %s651_s9  ;;  %p655_p4 = scmp.lt.u32.totalorder %s651_s9, %s803_s5 }
 0x254   :  { %p657_p5 = pnand %p655_p4, %p652_p3 }
 0x256   :  { %660 = shalt.err (!%p657_p5)
}
 0x257   :  { %333 = dma.vmem_to_hbm [thread:$0]  %s328_s3, 256, %s803_s5, [#allocation5], %s671_s30, %s671_s30, %s672_s6  }
 0x258   :  { %667 = dma.done.wait [#allocation5], 256  }
 0x259   :  { %668 = vsyncadd [#allocation5], 4294967040 }
 0x25a   :  { %337 = vsyncpa [#allocation4], 1 }
 0x25b   :  { %338 = vsyncpa [#allocation7], 1 }
 0x25c   :  { %339 = vsyncpa [#allocation10], 1 }
 0x25d   :  { %340 = vsyncpa [#allocation5], 1 }

</bundles_post_ra>
